<compile_context>
chip_gen: v7x
topology: tpu7x:2x2x1
jax: 0.10.0
libtpu: 0.0.40
codegen_flags: <defaults>
</compile_context>

<pallas_src>
import math
from functools import partial

import jax
import jax.numpy as jnp
from jax.experimental import pallas as pl
from jax.experimental.pallas import tpu as pltpu


_VMEM_LIMIT = 48 * 1024 * 1024   # > default scoped VMEM, < v7x 64 MiB physical

# tile preferences (re-derived per call; fall back to full dim at toy shapes)
_TM_PREF = 256      # rows (sublane) tile for activations
_TN_PREF = 512      # output-column (lane) tile
_TK_PREF = 512      # contraction tile
_TI_PREF = 512      # MLP intermediate tile
_TQ_PREF = 256      # attention query tile
_TKV_PREF = 512     # attention key/value tile


def _pick_tile(dim, pref, align):
    """Largest tile <= pref that divides dim and respects `align`; else full dim."""
    if dim <= pref:
        return dim
    t = (pref // align) * align
    while t >= align:
        if dim % t == 0:
            return t
        t -= align
    return dim


# ----------------------------- config -------------------------------------- #
class GemmaConfig:
    def __init__(self, vocab_size, hidden_size, intermediate_size,
                 num_hidden_layers, num_attention_heads, num_key_value_heads,
                 head_dim=256, max_position_embeddings=8192, rms_norm_eps=1e-6,
                 rope_theta=10000.0, attention_bias=False,
                 attention_dropout=0.0, pad_token_id=None, **kwargs):
        self.vocab_size = vocab_size
        self.max_position_embeddings = max_position_embeddings
        self.hidden_size = hidden_size
        self.intermediate_size = intermediate_size
        self.num_hidden_layers = num_hidden_layers
        self.num_attention_heads = num_attention_heads
        self.head_dim = head_dim
        self.key_value_heads = num_key_value_heads
        self.rms_norm_eps = rms_norm_eps
        self.rope_theta = rope_theta
        self.attention_bias = attention_bias
        self.attention_dropout = attention_dropout
        self.pad_token_id = pad_token_id


# ----------------------------- Pallas kernels ------------------------------ #
def _scale_kernel(x_ref, o_ref, *, scale):
    # hidden_states *= sqrt(hidden_size)
    o_ref[...] = x_ref[...] * scale


def _rmsnorm_kernel(x_ref, w_ref, o_ref, *, eps):
    # Gemma RMSNorm: x * rsqrt(mean(x^2) + eps) * (1 + w), stats in f32.
    x = x_ref[...]                                      # (tm, H) f32
    var = jnp.mean(x * x, axis=-1, keepdims=True)
    inv = jax.lax.rsqrt(var + eps)
    o_ref[...] = (x * inv * (1.0 + w_ref[...])).astype(o_ref.dtype)


def _matmul_kernel(x_ref, w_ref, o_ref, acc_ref):
    # Tiled matmul, f32 accumulation, bf16 operands.
    @pl.when(pl.program_id(2) == 0)
    def _():
        acc_ref[...] = jnp.zeros_like(acc_ref)
    acc_ref[...] += jnp.dot(x_ref[...], w_ref[...],
                            preferred_element_type=jnp.float32)

    @pl.when(pl.program_id(2) == pl.num_programs(2) - 1)
    def _():
        o_ref[...] = acc_ref[...].astype(o_ref.dtype)


def _matmul_residual_kernel(x_ref, w_ref, r_ref, o_ref, acc_ref):
    # Tiled matmul with the residual add fused into the finalize step.
    @pl.when(pl.program_id(2) == 0)
    def _():
        acc_ref[...] = jnp.zeros_like(acc_ref)
    acc_ref[...] += jnp.dot(x_ref[...], w_ref[...],
                            preferred_element_type=jnp.float32)

    @pl.when(pl.program_id(2) == pl.num_programs(2) - 1)
    def _():
        o_ref[...] = (acc_ref[...] +
                      r_ref[...].astype(jnp.float32)).astype(o_ref.dtype)


def _mlp_kernel(x_ref, wg_ref, wu_ref, wd_ref, r_ref, o_ref, acc_ref):
    # Fused GeGLU MLP streamed over the intermediate dim:
    #   acc += (gelu_tanh(x @ Wg_tile) * (x @ Wu_tile)) @ Wd_tile
    # finalize: out = residual + acc
    li = pl.program_id(1)

    @pl.when(li == 0)
    def _():
        acc_ref[...] = jnp.zeros_like(acc_ref)

    x = x_ref[...]                                      # (tm, H) bf16
    g = jnp.dot(x, wg_ref[...], preferred_element_type=jnp.float32)
    u = jnp.dot(x, wu_ref[...], preferred_element_type=jnp.float32)
    h = (jax.nn.gelu(g, approximate=True) * u).astype(jnp.bfloat16)
    acc_ref[...] += jnp.dot(h, wd_ref[...], preferred_element_type=jnp.float32)

    @pl.when(li == pl.num_programs(1) - 1)
    def _():
        o_ref[...] = (acc_ref[...] +
                      r_ref[...].astype(jnp.float32)).astype(o_ref.dtype)


def _flash_attn_kernel(q_ref, k_ref, v_ref, o_ref, m_sc, l_sc, acc_sc,
                       *, scale, tq, tk):
    # Flash attention over one (batch, kv_head) with the whole GQA group
    # resident: q_ref (G, tq, D), k_ref/v_ref (tk, D), online softmax in f32.
    qi = pl.program_id(2)
    ki = pl.program_id(3)

    @pl.when(ki == 0)
    def _():
        m_sc[...] = jnp.full_like(m_sc, -1e30)
        l_sc[...] = jnp.zeros_like(l_sc)
        acc_sc[...] = jnp.zeros_like(acc_sc)

    # Skip kv tiles that are entirely in the (masked) future.
    @pl.when(ki * tk < (qi + 1) * tq)
    def _():
        k = k_ref[...]                                   # (tk, D) bf16
        v = v_ref[...]                                   # (tk, D) bf16
        # in-kernel causal mask (no (B,1,S,S) mask tensor in HBM)
        row = qi * tq + jax.lax.broadcasted_iota(jnp.int32, (tq, tk), 0)
        col = ki * tk + jax.lax.broadcasted_iota(jnp.int32, (tq, tk), 1)
        bias = jnp.where(col > row, -1e30, 0.0)          # (tq, tk) f32

        group = q_ref.shape[0]
        for g in range(group):                           # static unroll (G small)
            q_g = q_ref[g]                               # (tq, D) bf16
            s = jax.lax.dot_general(
                q_g, k, (((1,), (1,)), ((), ())),
                preferred_element_type=jnp.float32) * scale
            s = s + bias
            m_prev = m_sc[g]                             # (tq, 1)
            m_new = jnp.maximum(m_prev, jnp.max(s, axis=-1, keepdims=True))
            alpha = jnp.exp(m_prev - m_new)
            p = jnp.exp(s - m_new)                       # (tq, tk) f32
            l_sc[g] = alpha * l_sc[g] + jnp.sum(p, axis=-1, keepdims=True)
            pv = jax.lax.dot_general(
                p.astype(jnp.bfloat16), v, (((1,), (0,)), ((), ())),
                preferred_element_type=jnp.float32)      # (tq, D)
            acc_sc[g] = alpha * acc_sc[g] + pv
            m_sc[g] = m_new

    @pl.when(ki == pl.num_programs(3) - 1)
    def _():
        o_ref[...] = (acc_sc[...] *
                      pl.reciprocal(l_sc[...], approx=True)).astype(o_ref.dtype)


# ----------------------------- Pallas wrappers ------------------------------ #
def scale_pallas(x, scale):
    M, H = x.shape
    tm = _pick_tile(M, 1024, 8)
    return pl.pallas_call(
        partial(_scale_kernel, scale=scale),
        out_shape=jax.ShapeDtypeStruct((M, H), x.dtype),
        grid=(M // tm,),
        in_specs=[pl.BlockSpec((tm, H), lambda i: (i, 0))],
        out_specs=pl.BlockSpec((tm, H), lambda i: (i, 0)),
        compiler_params=pltpu.CompilerParams(
            dimension_semantics=("parallel",), vmem_limit_bytes=_VMEM_LIMIT),
    )(x)


def rmsnorm_pallas(x, w, eps, out_dtype):
    M, H = x.shape
    tm = _pick_tile(M, 512, 8)
    return pl.pallas_call(
        partial(_rmsnorm_kernel, eps=eps),
        out_shape=jax.ShapeDtypeStruct((M, H), out_dtype),
        grid=(M // tm,),
        in_specs=[pl.BlockSpec((tm, H), lambda i: (i, 0)),
                  pl.BlockSpec((1, H), lambda i: (0, 0))],
        out_specs=pl.BlockSpec((tm, H), lambda i: (i, 0)),
        compiler_params=pltpu.CompilerParams(
            dimension_semantics=("parallel",), vmem_limit_bytes=_VMEM_LIMIT),
    )(x, w.reshape(1, -1))


def matmul_pallas(x, w, residual=None, out_dtype=jnp.float32):
    M, K = x.shape
    K2, N = w.shape
    assert K == K2
    tm = _pick_tile(M, _TM_PREF, 8)
    tn = _pick_tile(N, _TN_PREF, 128)
    tk = _pick_tile(K, _TK_PREF, 128)
    grid = (M // tm, N // tn, K // tk)

    x_spec = pl.BlockSpec((tm, tk), lambda i, j, k: (i, k))
    w_spec = pl.BlockSpec((tk, tn), lambda i, j, k: (k, j))
    o_spec = pl.BlockSpec((tm, tn), lambda i, j, k: (i, j))

    cparams = pltpu.CompilerParams(
        dimension_semantics=("parallel", "parallel", "arbitrary"),
        vmem_limit_bytes=_VMEM_LIMIT)
    cost = pl.CostEstimate(flops=2 * M * N * K, transcendentals=0,
                           bytes_accessed=2 * (M * K + K * N) + 4 * M * N)

    if residual is None:
        kernel = _matmul_kernel
        in_specs = [x_spec, w_spec]
        args = (x, w)
    else:
        kernel = _matmul_residual_kernel
        r_spec = pl.BlockSpec((tm, tn), lambda i, j, k: (i, j))
        in_specs = [x_spec, w_spec, r_spec]
        args = (x, w, residual)

    return pl.pallas_call(
        kernel,
        out_shape=jax.ShapeDtypeStruct((M, N), out_dtype),
        grid=grid,
        in_specs=in_specs,
        out_specs=o_spec,
        scratch_shapes=[pltpu.VMEM((tm, tn), jnp.float32)],
        compiler_params=cparams,
        cost_estimate=cost,
    )(*args)


def mlp_pallas(x, wg, wu, wd, residual):
    M, H = x.shape
    _, I = wg.shape
    tm = _pick_tile(M, _TM_PREF, 8)
    ti = _pick_tile(I, _TI_PREF, 128)
    grid = (M // tm, I // ti)

    cparams = pltpu.CompilerParams(
        dimension_semantics=("parallel", "arbitrary"),
        vmem_limit_bytes=_VMEM_LIMIT)
    cost = pl.CostEstimate(flops=6 * M * H * I, transcendentals=M * I,
                           bytes_accessed=2 * (M * H + 3 * H * I) + 8 * M * H)

    return pl.pallas_call(
        _mlp_kernel,
        out_shape=jax.ShapeDtypeStruct((M, H), jnp.float32),
        grid=grid,
        in_specs=[
            pl.BlockSpec((tm, H), lambda i, l: (i, 0)),   # x (resident over l)
            pl.BlockSpec((H, ti), lambda i, l: (0, l)),   # gate tile
            pl.BlockSpec((H, ti), lambda i, l: (0, l)),   # up tile
            pl.BlockSpec((ti, H), lambda i, l: (l, 0)),   # down tile
            pl.BlockSpec((tm, H), lambda i, l: (i, 0)),   # residual
        ],
        out_specs=pl.BlockSpec((tm, H), lambda i, l: (i, 0)),
        scratch_shapes=[pltpu.VMEM((tm, H), jnp.float32)],
        compiler_params=cparams,
        cost_estimate=cost,
    )(x, wg, wu, wd, residual)


def flash_attention_pallas(q, k, v, scale):
    # q: (B, Hkv, G, S, D) bf16 ; k, v: (B, Hkv, S, D) bf16
    B, Hkv, G, S, D = q.shape
    tq = _pick_tile(S, _TQ_PREF, 8)
    tk = _pick_tile(S, _TKV_PREF, 8)
    grid = (B, Hkv, S // tq, S // tk)

    cost = pl.CostEstimate(
        flops=4 * B * Hkv * G * S * S * D,
        transcendentals=B * Hkv * G * S * S,
        bytes_accessed=2 * (2 * B * Hkv * G * S * D + 2 * B * Hkv * S * D))

    return pl.pallas_call(
        partial(_flash_attn_kernel, scale=scale, tq=tq, tk=tk),
        out_shape=jax.ShapeDtypeStruct((B, Hkv, G, S, D), jnp.bfloat16),
        grid=grid,
        in_specs=[
            pl.BlockSpec((None, None, G, tq, D),
                         lambda b, h, qi, ki: (b, h, 0, qi, 0)),
            pl.BlockSpec((None, None, tk, D),
                         lambda b, h, qi, ki: (b, h, ki, 0)),
            pl.BlockSpec((None, None, tk, D),
                         lambda b, h, qi, ki: (b, h, ki, 0)),
        ],
        out_specs=pl.BlockSpec((None, None, G, tq, D),
                               lambda b, h, qi, ki: (b, h, 0, qi, 0)),
        scratch_shapes=[
            pltpu.VMEM((G, tq, 1), jnp.float32),   # m
            pltpu.VMEM((G, tq, 1), jnp.float32),   # l
            pltpu.VMEM((G, tq, D), jnp.float32),   # acc
        ],
        compiler_params=pltpu.CompilerParams(
            dimension_semantics=("parallel", "parallel", "parallel", "arbitrary"),
            vmem_limit_bytes=_VMEM_LIMIT),
        cost_estimate=cost,
    )(q, k, v)


# ----------------------------- RoPE glue (plain JAX) ------------------------ #
# TODO(synk): RoPE could be folded into the flash-attention prologue with
# pltpu.roll; here it stays in JAX where XLA fuses it with the head transpose.
def rope_cos_sin(position_ids, head_dim, theta):
    inv_freq = 1.0 / (theta ** (jnp.arange(0, head_dim, 2, dtype=jnp.float32)
                                / head_dim))
    freqs = position_ids.astype(jnp.float32)[..., None] * inv_freq[None, None, :]
    emb = jnp.concatenate([freqs, freqs], axis=-1)          # (B, S, D)
    return jnp.cos(emb), jnp.sin(emb)


def _rotate_half(x):
    x1, x2 = jnp.split(x, 2, axis=-1)
    return jnp.concatenate([-x2, x1], axis=-1)


def _apply_rope(x, cos, sin):
    return x * cos + _rotate_half(x) * sin


# ----------------------------- parameters ---------------------------------- #
def init_params(cfg, key):
    H, I = cfg.hidden_size, cfg.intermediate_size
    hd, nh, nkv = cfg.head_dim, cfg.num_attention_heads, cfg.key_value_heads

    def dense(k, shape):
        w = jax.random.normal(k, shape, dtype=jnp.float32) * 0.02
        return w.astype(jnp.bfloat16)                     # bf16 weights for MXU

    layers = []
    for _ in range(cfg.num_hidden_layers):
        key, *ks = jax.random.split(key, 6)
        layers.append(dict(
            qkv_proj=dense(ks[0], (H, (nh + 2 * nkv) * hd)),   # fused q|k|v
            o_proj=dense(ks[1], (nh * hd, H)),
            gate=dense(ks[2], (H, I)),
            up=dense(ks[3], (H, I)),
            down=dense(ks[4], (I, H)),
            input_ln=jnp.zeros((H,), jnp.float32),   # Gemma norm weights init to 0
            post_ln=jnp.zeros((H,), jnp.float32),
        ))
    return dict(layers=layers, final_norm=jnp.zeros((H,), jnp.float32))


# ----------------------------- GemmaModel forward --------------------------- #
def gemma_model_forward(params, cfg, inputs_embeds, attention_mask=None,
                        position_ids=None, kv_cache=None):
    # TODO(synk): KVCache is an empty stub in the source; decode-time caching not modeled.
    # TODO(synk): arbitrary attention_mask is not threaded into the flash kernel;
    #             the causal mask is generated in-kernel (prefill semantics).
    B, S, H = inputs_embeds.shape
    hd, nh, nkv = cfg.head_dim, cfg.num_attention_heads, cfg.key_value_heads
    G = nh // nkv
    M = B * S

    if position_ids is None:
        position_ids = jnp.broadcast_to(jnp.arange(S, dtype=jnp.int32)[None, :],
                                        (B, S))

    # hidden_states *= sqrt(hidden_size)  (residual stream kept in f32)
    hidden = scale_pallas(inputs_embeds.reshape(M, H), float(H) ** 0.5)
    cos, sin = rope_cos_sin(position_ids, hd, cfg.rope_theta)   # (B, S, hd)

    for layer in params["layers"]:
        # --- self-attention block ---
        normed = rmsnorm_pallas(hidden, layer["input_ln"], cfg.rms_norm_eps,
                                jnp.bfloat16)
        qkv = matmul_pallas(normed, layer["qkv_proj"], out_dtype=jnp.bfloat16)
        q, k, v = jnp.split(qkv, [nh * hd, (nh + nkv) * hd], axis=-1)
        q = q.reshape(B, S, nkv, G, hd).transpose(0, 2, 3, 1, 4)   # (B,nkv,G,S,hd)
        k = k.reshape(B, S, nkv, hd).transpose(0, 2, 1, 3)         # (B,nkv,S,hd)
        v = v.reshape(B, S, nkv, hd).transpose(0, 2, 1, 3)
        q = _apply_rope(q, cos[:, None, None], sin[:, None, None]).astype(jnp.bfloat16)
        k = _apply_rope(k, cos[:, None], sin[:, None]).astype(jnp.bfloat16)
        v = v.astype(jnp.bfloat16)

        attn = flash_attention_pallas(q, k, v, scale=hd ** -0.5)   # (B,nkv,G,S,hd)
        attn = attn.transpose(0, 3, 1, 2, 4).reshape(M, nh * hd)
        hidden = matmul_pallas(attn, layer["o_proj"], residual=hidden,
                               out_dtype=jnp.float32)              # fused residual

        # --- MLP block (fused GeGLU + residual) ---
        normed = rmsnorm_pallas(hidden, layer["post_ln"], cfg.rms_norm_eps,
                                jnp.bfloat16)
        hidden = mlp_pallas(normed, layer["gate"], layer["up"], layer["down"],
                            residual=hidden)

    hidden = rmsnorm_pallas(hidden, params["final_norm"], cfg.rms_norm_eps,
                            jnp.float32)
    return hidden.reshape(B, S, H)


# ----------------------------- main ----------------------------------------- #
if __name__ == "__main__":
    cfg = GemmaConfig(vocab_size=128, hidden_size=64, intermediate_size=128,
                      num_hidden_layers=2, num_attention_heads=4,
                      num_key_value_heads=1, head_dim=32,
                      rms_norm_eps=1e-6, rope_theta=10000.0, pad_token_id=0)

    key = jax.random.PRNGKey(0)
    k_embed, k_params = jax.random.split(key)

    B, S = 2, 8
    inputs_embeds = jax.random.normal(k_embed, (B, S, cfg.hidden_size),
                                      dtype=jnp.float32)
    position_ids = jnp.broadcast_to(jnp.arange(S, dtype=jnp.int32)[None, :], (B, S))

    params = init_params(cfg, k_params)

    out = gemma_model_forward(params, cfg, inputs_embeds,
                              attention_mask=None, position_ids=position_ids)
    out = jax.block_until_ready(out)

    assert out.shape == (B, S, cfg.hidden_size)
    assert bool(jnp.all(jnp.isfinite(out)))
    print("KERNEL_OK")
</pallas_src>

<mosaic_0001>
module attributes {stable_mosaic.version = 11 : i64} {
  func.func @_scale_kernel(%arg0: i32, %arg1: memref<16x64xf32, #tpu.memory_space<vmem>>, %arg2: memref<16x64xf32, #tpu.memory_space<vmem>>) attributes {dimension_semantics = [#tpu.dimension_semantics<parallel>], iteration_bounds = array<i64: 1>, scalar_prefetch = 0 : i64, scratch_operands = 0 : i64, tpu.core_type = #tpu.core_type<tc>, window_params = [{transform_indices = @transform_0, window_bounds = array<i64: 16, 64>}, {transform_indices = @transform_1, window_bounds = array<i64: 16, 64>}]} {
    %c0 = arith.constant 0 : index
    %c0_0 = arith.constant 0 : index
    %0 = vector.load %arg1[%c0, %c0_0] : memref<16x64xf32, #tpu.memory_space<vmem>>, vector<16x64xf32>
    %cst = arith.constant 8.000000e+00 : f32
    %1 = vector.broadcast %cst : f32 to vector<16x64xf32>
    %2 = arith.mulf %0, %1 : vector<16x64xf32>
    %c0_1 = arith.constant 0 : index
    %c0_2 = arith.constant 0 : index
    %3 = vector.load %arg2[%c0_1, %c0_2] : memref<16x64xf32, #tpu.memory_space<vmem>>, vector<16x64xf32>
    tpu.vector_store %arg2[%c0_1, %c0_2], %2 {strides = array<i32>} : memref<16x64xf32, #tpu.memory_space<vmem>>, vector<16x64xf32>,
    return
  }
  func.func @transform_0(%arg0: i32) -> (i32, i32) {
    %c0_i32 = arith.constant 0 : i32
    %c0_i32_0 = arith.constant 0 : i32
    return %arg0, %c0_i32 : i32, i32
  }
  func.func @transform_1(%arg0: i32) -> (i32, i32) {
    %c0_i32 = arith.constant 0 : i32
    %c0_i32_0 = arith.constant 0 : i32
    return %arg0, %c0_i32 : i32, i32
  }
}

</mosaic_0001>

<bundles_post_ra>
// kernel: tpu_custom_call.1
= control target key start
LH: loop header
LB: loop body
LE: loop exit
PB: predicated region body
PF: predicated region fallthrough
CT: control target
= control target key end

     0   :  { %6 = vsyncpa [#allocation3], 0  ;;  %s143_s0 = inlined_call_operand.hbm [shape: f32[16,64], index: 0, kind: input, shape index: {}]   ;;  %s144_s1 = inlined_call_operand.hbm [shape: f32[16,64], index: 1, kind: output, shape index: {}]  }
   0x1   :  { %7 = vsyncpa [#allocation4], 0  ;;  %s99_s6 = smov [#allocation2]   ;;  %s51_s10 = scalar_lea.hbm %s143_s0, 256 }
   0x2   :  { %s13_s7 = sshll.u32 %s99_s6, 4  ;;  %p52_p0 = scmp.ne.s32.totalorder %s143_s0, %s51_s10  ;;  %s14_s7 = int_to_ptr.vmem [resolvable:$true] %s13_s7 }
   0x3   :  { %p55_p1 = scmp.lt.u32.totalorder %s51_s10, %s143_s0 }
   0x5   :  { %p57_p2 = pnand %p55_p1, %p52_p0 }
   0x7   :  { %60 = shalt.err (!%p57_p2)
}
   0x8   :  { %s61_s15 = scalar_lea.vmem %s14_s7, 256  ;;  %p66_p4 = scmp.lt.s32.totalorder %s14_s7, %s14_s7 }
   0x9   :  { %p62_p3 = scmp.ne.s32.totalorder %s14_s7, %s61_s15  ;;  %p67_p5 = scmp.lt.s32.totalorder %s61_s15, %s61_s15 }
   0xb   :  { %p68_p6 = por %p67_p5, %p66_p4 }
   0xd   :  { %p69_p7 = pnand %p68_p6, %p62_p3 }
   0xf   :  { %72 = shalt.err (!%p69_p7)
}
  0x10   :  { %s100_s16 = smov 128   ;;  %s101_s17 = smov 8  }
  0x11   :  { %19 = dma.hbm_to_vmem [thread:$0]  %s143_s0, 256, %s14_s7, [#allocation3], %s100_s16, %s100_s16, %s101_s17  }
  0x12   :  { %95 = dma.done.wait [#allocation3], 256  }
  0x13   :  { %96 = vsyncadd [#allocation3], 4294967040  ;;  %s102_s20 = smov [#allocation5]   ;;  %v23_v0 = vld [vmem:[#allocation2] sm:$0xff]  ;;  %vm27_vm0 = vcmask 523264   ;;  %v24_v1 = vld [vmem:[#allocation2 + $0x8] sm:$0xff] }
  0x14   :  { %s35_s21 = sshll.u32 %s102_s20, 4  ;;  %v25_v2 = vmul.f32 8.0, %v23_v0  ;;  %v26_v3 = vmul.f32 8.0, %v24_v1  ;;  %s36_s21 = int_to_ptr.vmem [resolvable:$true] %s35_s21 }
  0x15   :  { %s73_s22 = scalar_lea.vmem %s36_s21, 256  ;;  %p78_p9 = scmp.lt.s32.totalorder %s36_s21, %s36_s21 }
  0x16   :  { %28 = vst.msk [vmem:[#allocation5] sm:$0xff] %vm27_vm0, %v25_v2  ;;  %29 = vst.msk [vmem:[#allocation5 + $0x8] sm:$0xff] %vm27_vm0, %v26_v3  ;;  %p74_p8 = scmp.ne.s32.totalorder %s36_s21, %s73_s22  ;;  %p79_p10 = scmp.lt.s32.totalorder %s73_s22, %s73_s22 }
  0x18   :  { %p80_p11 = por %p79_p10, %p78_p9 }
  0x1a   :  { %p81_p12 = pnand %p80_p11, %p74_p8 }
  0x1c   :  { %84 = shalt.err (!%p81_p12)
}
  0x1d   :  { %s85_s24 = scalar_lea.hbm %s144_s1, 256 }
  0x1e   :  { %p86_p13 = scmp.ne.s32.totalorder %s144_s1, %s85_s24  ;;  %p89_p0 = scmp.lt.u32.totalorder %s85_s24, %s144_s1 }
  0x20   :  { %p91_p1 = pnand %p89_p0, %p86_p13 }
  0x22   :  { %94 = shalt.err (!%p91_p1)
}
  0x23   :  { %41 = dma.vmem_to_hbm [thread:$0]  %s36_s21, 256, %s144_s1, [#allocation4], %s100_s16, %s100_s16, %s101_s17  }
  0x24   :  { %97 = dma.done.wait [#allocation4], 256  }
  0x25   :  { %98 = vsyncadd [#allocation4], 4294967040 }
  0x26   :  { %45 = vsyncpa [#allocation3], 1 }
  0x27   :  { %46 = vsyncpa [#allocation4], 1 }

</bundles_post_ra>
